<compile_context>
chip_gen: v5e
topology: v5e:2x2
jax: 0.10.0
libtpu: 0.0.40
codegen_flags: <defaults>
</compile_context>

<pallas_src>
import numpy as np
import jax
import jax.numpy as jnp
from jax import lax
from jax.experimental import pallas as pl
from jax.experimental.pallas import tpu as pltpu


# VMEM budget chosen to fit the tightest generation (v7x: 64 MiB physical per
# TensorCore); it also raises the default scoped limits on v5e (16 MiB) / v6e (32 MiB).
_VMEM_BUDGET_BYTES = 48 * 1024 * 1024


def _default_compute_dtype():
    """bf16 tanh/gate/carry on v6e/v7x (bf16 VPU+EUP); f32 on v5e and older."""
    try:
        kind = jax.devices()[0].device_kind.lower()
    except Exception:
        return jnp.float32
    if ("v6" in kind) or ("v7" in kind):
        return jnp.bfloat16
    return jnp.float32


def _derive_time_chunk(T, Bt, NH, requested):
    """Largest Tc whose double-buffered streams + resident weight fit the budget."""
    fixed = NH * NH * 2 + Bt * NH * 4            # Wh^T bf16 (single buffer) + carry scratch
    per_t = 2 * (2 * Bt * NH * 2) + 2 * NH * 1   # 2x (ih + h_all) bf16 + 2x int8 mask
    tc = max(1, (_VMEM_BUDGET_BYTES - fixed) // per_t)
    return int(max(1, min(requested, T, tc)))


# ---------------------------------------------------------------------------
# Pallas kernel: one grid step == one chunk of Tc timesteps of the serial
# recurrence for one batch tile.  Hidden state lives in a VMEM scratch carried
# across the (serial) time axis of the grid.
# ---------------------------------------------------------------------------
def _cwrnn_kernel(ih_ref, act_ref, whT_ref, h_all_ref, h_state):
    # ih_ref    : (Tc, Bt, NH) bf16 -- precomputed Wi@x + bi + bh per step
    # act_ref   : (Tc, 1, NH)  int8 -- clockwork gate (1 active / 0 frozen or padded)
    # whT_ref   : (NH, NH)     bf16 -- recurrent weight (transposed), single-buffered
    # h_all_ref : (Tc, Bt, NH) bf16 -- hidden trajectory written every step
    # h_state   : (Bt, NH)          -- recurrence carry (VMEM scratch, per batch tile)
    @pl.when(pl.program_id(1) == 0)          # first time-chunk of a batch tile
    def _():
        h_state[...] = jnp.zeros_like(h_state)

    Tc = ih_ref.shape[0]
    compute_dtype = h_state.dtype

    def step(t, h_prev):
        ih = ih_ref[t]                       # (Bt, NH) bf16
        gate = act_ref[t] != 0               # (1, NH)  clockwork gate for this step
        # Weight read stays inside the step: rides nearly-free vld slots and
        # avoids pinning NH*NH bf16 in vregs (which forces spills at large NH).
        rec = jnp.dot(h_prev.astype(jnp.bfloat16), whT_ref[...],
                      preferred_element_type=jnp.float32)
        h_new = jnp.tanh((ih + rec).astype(compute_dtype))
        h = jnp.where(gate, h_new, h_prev)   # single vsel on the serial path
        h_all_ref[t] = h.astype(h_all_ref.dtype)
        return h

    # TODO(synk): exploit the clockwork schedule (slice the matmul / tanh to the
    # per-step active lane width via scalar prefetch) when k*nh % 128 == 0.
    h_state[...] = lax.fori_loop(0, Tc, step, h_state[...], unroll=min(Tc, 8))


# ---------------------------------------------------------------------------
# Wrapper: weight splitting, hoisted projections, padding, pallas_call
# ---------------------------------------------------------------------------
def clockwork_rnn_forward(X, Wi, Wh, Wo, clock_periods, nh,
                          time_chunk=128, batch_tile=None, compute_dtype=None):
    T, B, ni = X.shape
    nclocks = len(clock_periods)
    NH = nclocks * nh
    no = Wo.shape[0]
    if compute_dtype is None:
        compute_dtype = _default_compute_dtype()

    # Split augmented weight matrices [W | b] into transposed matrix + bias row.
    WiT = jnp.asarray(Wi[:, :ni].T, jnp.float32)     # (ni, NH)
    bi = jnp.asarray(Wi[:, ni:].T, jnp.float32)      # (1, NH)
    WhT = jnp.asarray(Wh[:, :NH].T, jnp.bfloat16)    # (NH, NH)  MXU-native bf16
    bh = jnp.asarray(Wh[:, NH:].T, jnp.float32)      # (1, NH)
    WoT = jnp.asarray(Wo[:, :NH].T, jnp.float32)     # (NH, no)
    bo = jnp.asarray(Wo[:, NH:].T, jnp.float32)      # (1, no)

    # Batch tiling: pad to a multiple of 8 sublanes.  Tiles up to 128 rows fill
    # the MXU M dimension; the leading "parallel" grid axis lets v7x shard batch
    # tiles across its two TensorCores (no-op on single-TC v5e/v6e).
    Bp8 = -(-B // 8) * 8
    Bt = min(Bp8, 128) if batch_tile is None else batch_tile
    Bp = -(-B // Bt) * Bt
    nb = Bp // Bt

    Tc = _derive_time_chunk(T, Bt, NH, time_chunk)
    Tp = -(-T // Tc) * Tc

    Xp = jnp.zeros((Tp, Bp, ni), jnp.float32).at[:T, :B].set(X.astype(jnp.float32))

    # Hoisted input projection: one batched matmul over all (t, b); fold bi + bh
    # into the preactivation.  Streamed into the kernel as bf16.
    ih_all = (jnp.einsum('tbi,ih->tbh', Xp, WiT,
                         preferred_element_type=jnp.float32)
              + (bi + bh)[None]).astype(jnp.bfloat16)

    # Clock schedule: active[t, j] = 1 iff t % period_j == 0; zero for padded
    # timesteps so the state is frozen there.  int8 -> 4x smaller mask DMA.
    schedules = np.repeat(np.asarray(clock_periods), nh)                 # (NH,)
    active = (np.arange(Tp)[:, None] % schedules[None, :] == 0)
    active &= (np.arange(Tp)[:, None] < T)
    active = jnp.asarray(active.astype(np.int8)).reshape(Tp, 1, NH)      # (Tp,1,NH)

    h_all = pl.pallas_call(
        _cwrnn_kernel,
        out_shape=jax.ShapeDtypeStruct((Tp, Bp, NH), jnp.bfloat16),
        grid_spec=pltpu.PrefetchScalarGridSpec(
            num_scalar_prefetch=0,
            grid=(nb, Tp // Tc),                                   # (batch tiles, time chunks)
            in_specs=[
                pl.BlockSpec((Tc, Bt, NH), lambda b, c: (c, b, 0)),      # ih chunk
                pl.BlockSpec((Tc, 1, NH), lambda b, c: (c, 0, 0)),       # gate chunk (int8)
                pl.BlockSpec((NH, NH), lambda b, c: (0, 0),
                             pipeline_mode=pl.Buffered(1)),              # Wh^T: single buffer
            ],
            out_specs=pl.BlockSpec((Tc, Bt, NH), lambda b, c: (c, b, 0)),
            scratch_shapes=[pltpu.VMEM((Bt, NH), compute_dtype)],        # recurrence carry
        ),
        compiler_params=pltpu.CompilerParams(
            dimension_semantics=("parallel", "arbitrary"),               # batch ∥, time serial
            vmem_limit_bytes=_VMEM_BUDGET_BYTES),
    )(ih_all, active, WhT)

    # Hoisted output projection over the lane-dense bf16 trajectory.
    h_valid = h_all[:T, :B, :]                                     # (T, B, NH) bf16
    ys = jnp.tanh(jnp.einsum('tbh,ho->tbo', h_valid, WoT,
                             preferred_element_type=jnp.float32) + bo[None])
    H = h_valid[T - 1].T.astype(jnp.float32)                       # (NH, B)
    return ys, H


# ---------------------------------------------------------------------------
# Deterministic parameter construction mirroring ClockworkRNN._build()
# ---------------------------------------------------------------------------
def _glorotize(W):
    W = W * np.sqrt(6)
    W = W / np.sqrt(np.sum(W.shape))
    return W


def _recurrent_mask(nclocks, nh):
    rows = []
    for c in range(nclocks, 0, -1):
        rows.append(np.concatenate(
            [np.zeros((nh, nh * (nclocks - c))), np.ones((nh, nh * c))], axis=1))
    return np.concatenate(rows, axis=0)


def build_params(ni, nh, no, clock_periods, seed=0):
    rng = np.random.RandomState(seed)
    nclocks = len(clock_periods)
    NH = nclocks * nh
    Wi = _glorotize(rng.randn(NH, ni + 1))
    Wh = rng.randn(NH, NH + 1)
    Wo = _glorotize(rng.randn(no, NH + 1))
    U, _, _ = np.linalg.svd(Wh[:, :-1])
    Wh[:, :-1] = U * _recurrent_mask(nclocks, nh)
    return (Wi.astype(np.float32), Wh.astype(np.float32), Wo.astype(np.float32))


# ---------------------------------------------------------------------------
# Pure numpy reference (literal transcription of the PyTorch forward)
# ---------------------------------------------------------------------------
def reference_forward(X, Wi, Wh, Wo, clock_periods, nh):
    T, B, ni = X.shape
    nclocks = len(clock_periods)
    NH = nclocks * nh
    no = Wo.shape[0]
    schedules = np.repeat(np.asarray(clock_periods), nh)
    Xc = np.transpose(np.asarray(X, np.float64), (0, 2, 1))       # (T, ni, B)
    Wi, Wh, Wo = (np.asarray(w, np.float64) for w in (Wi, Wh, Wo))
    H_prev = np.zeros((NH, B))
    Ys = np.zeros((T, no, B))
    for t in range(T):
        active = (t % schedules == 0).astype(np.float64)[:, None]
        inputn = np.concatenate([Xc[t], np.ones((1, B))], 0)
        i_h = Wi @ inputn
        _H_prev = np.concatenate([H_prev, np.ones((1, B))], 0)
        H_new = np.tanh(i_h + Wh @ _H_prev)
        H = active * H_new + (1 - active) * H_prev
        H_prev = H
        _H = np.concatenate([H, np.ones((1, B))], 0)
        Ys[t] = np.tanh(Wo @ _H)
    return np.transpose(Ys, (0, 2, 1)), H


if __name__ == "__main__":
    # Small shapes: ni=16, nh=32, 4 clocks -> NH=128 (lane aligned), no=8, T=8, B=4
    ni, nh, no = 16, 32, 8
    clock_periods = [1, 2, 4, 8]
    T, B = 8, 4

    Wi, Wh, Wo = build_params(ni, nh, no, clock_periods, seed=0)

    key = jax.random.PRNGKey(0)
    X = jax.random.normal(key, (T, B, ni), dtype=jnp.float32)

    ys, H = clockwork_rnn_forward(X, Wi, Wh, Wo, clock_periods, nh)
    ys = jax.block_until_ready(ys)
    H = jax.block_until_ready(H)

    ys_ref, H_ref = reference_forward(np.asarray(X), Wi, Wh, Wo, clock_periods, nh)
    # bf16 recurrent weights / ih / hidden trajectory (and bf16 tanh on v6e/v7x)
    # with f32 accumulation: looser tolerance against the float64 reference.
    np.testing.assert_allclose(np.asarray(ys), ys_ref, atol=5e-2, rtol=5e-2)
    np.testing.assert_allclose(np.asarray(H), H_ref, atol=5e-2, rtol=5e-2)

    print("KERNEL_OK")
</pallas_src>

<mosaic_0001>
module attributes {stable_mosaic.version = 11 : i64} {
  func.func @_cwrnn_kernel(%arg0: i32, %arg1: i32, %arg2: memref<8x8x128xbf16, #tpu.memory_space<vmem>>, %arg3: memref<8x1x128xi8, #tpu.memory_space<vmem>>, %arg4: memref<128x128xbf16, #tpu.memory_space<vmem>>, %arg5: memref<8x8x128xbf16, #tpu.memory_space<vmem>>, %arg6: memref<8x128xf32, #tpu.memory_space<vmem>>) attributes {dimension_semantics = [#tpu.dimension_semantics<parallel>, #tpu.dimension_semantics<arbitrary>], iteration_bounds = array<i64: 1, 1>, scalar_prefetch = 0 : i64, scratch_operands = 1 : i64, tpu.core_type = #tpu.core_type<tc>, window_params = [{transform_indices = @transform_0, window_bounds = array<i64: 8, 8, 128>}, {transform_indices = @transform_1, window_bounds = array<i64: 8, 1, 128>}, {pipeline_mode = #tpu.pipeline_mode<synchronous>, transform_indices = @transform_2, window_bounds = array<i64: 128, 128>}, {transform_indices = @transform_3, window_bounds = array<i64: 8, 8, 128>}]} {
    %c0_i32 = arith.constant 0 : i32
    %0 = arith.cmpi eq, %arg1, %c0_i32 : i32
    %1 = arith.extui %0 : i1 to i32
    %c0_i32_0 = arith.constant 0 : i32
    %2 = arith.cmpi ne, %1, %c0_i32_0 : i32
    scf.if %2 {
      %cst_83 = arith.constant 0.000000e+00 : f32
      %181 = vector.broadcast %cst_83 : f32 to vector<8x128xf32>
      %c0_84 = arith.constant 0 : index
      %c0_85 = arith.constant 0 : index
      %182 = vector.load %arg6[%c0_84, %c0_85] : memref<8x128xf32, #tpu.memory_space<vmem>>, vector<8x128xf32>
      tpu.vector_store %arg6[%c0_84, %c0_85], %181 {strides = array<i32>} : memref<8x128xf32, #tpu.memory_space<vmem>>, vector<8x128xf32>,
    } else {
    }
    %c0 = arith.constant 0 : index
    %c0_1 = arith.constant 0 : index
    %3 = vector.load %arg6[%c0, %c0_1] : memref<8x128xf32, #tpu.memory_space<vmem>>, vector<8x128xf32>
    %c0_i32_2 = arith.constant 0 : i32
    %4 = arith.index_cast %c0_i32_2 : i32 to index
    %c0_3 = arith.constant 0 : index
    %c0_4 = arith.constant 0 : index
    %5 = vector.load %arg2[%4, %c0_3, %c0_4] : memref<8x8x128xbf16, #tpu.memory_space<vmem>>, vector<1x8x128xbf16>
    %6 = vector.shape_cast %5 : vector<1x8x128xbf16> to vector<8x128xbf16>
    %7 = arith.index_cast %c0_i32_2 : i32 to index
    %c0_5 = arith.constant 0 : index
    %c0_6 = arith.constant 0 : index
    %8 = vector.load %arg3[%7, %c0_5, %c0_6] : memref<8x1x128xi8, #tpu.memory_space<vmem>>, vector<1x1x128xi8>
    %9 = vector.shape_cast %8 : vector<1x1x128xi8> to vector<1x128xi8>
    %c0_i8 = arith.constant 0 : i8
    %10 = vector.broadcast %c0_i8 : i8 to vector<1x128xi8>
    %11 = arith.cmpi ne, %9, %10 : vector<1x128xi8>
    %12 = arith.truncf %3 : vector<8x128xf32> to vector<8x128xbf16>
    %c0_7 = arith.constant 0 : index
    %c0_8 = arith.constant 0 : index
    %13 = vector.load %arg4[%c0_7, %c0_8] : memref<128x128xbf16, #tpu.memory_space<vmem>>, vector<128x128xbf16>
    %cst = arith.constant dense<0.000000e+00> : vector<8x128xf32>
    %14 = tpu.matmul %12, %13, %cst {dimension_numbers = #tpu.dot_dimension_numbers<[1], [0], [0], [1], [0, 0, 1, 1], [], []>} : vector<8x128xbf16>, vector<128x128xbf16>, vector<8x128xf32> -> vector<8x128xf32>
    %15 = arith.extf %6 : vector<8x128xbf16> to vector<8x128xf32>
    %16 = arith.addf %15, %14 : vector<8x128xf32>
    %17 = math.tanh %16 : vector<8x128xf32>
    %18 = vector.shape_cast %11 : vector<1x128xi1> to vector<1x128xi1>
    %19 = vector.broadcast %18 : vector<1x128xi1> to vector<8x128xi1>
    %20 = arith.select %19, %17, %3 : vector<8x128xi1>, vector<8x128xf32>
    %21 = arith.truncf %20 : vector<8x128xf32> to vector<8x128xbf16>
    %22 = arith.index_cast %c0_i32_2 : i32 to index
    %c0_9 = arith.constant 0 : index
    %c0_10 = arith.constant 0 : index
    %23 = vector.load %arg5[%22, %c0_9, %c0_10] : memref<8x8x128xbf16, #tpu.memory_space<vmem>>, vector<1x8x128xbf16>
    %24 = vector.shape_cast %23 : vector<1x8x128xbf16> to vector<8x128xbf16>
    %25 = vector.shape_cast %21 : vector<8x128xbf16> to vector<1x8x128xbf16>
    tpu.vector_store %arg5[%22, %c0_9, %c0_10], %25 {strides = array<i32>} : memref<8x8x128xbf16, #tpu.memory_space<vmem>>, vector<1x8x128xbf16>,
    %c1_i32 = arith.constant 1 : i32
    %26 = arith.index_cast %c1_i32 : i32 to index
    %c0_11 = arith.constant 0 : index
    %c0_12 = arith.constant 0 : index
    %27 = vector.load %arg2[%26, %c0_11, %c0_12] : memref<8x8x128xbf16, #tpu.memory_space<vmem>>, vector<1x8x128xbf16>
    %28 = vector.shape_cast %27 : vector<1x8x128xbf16> to vector<8x128xbf16>
    %29 = arith.index_cast %c1_i32 : i32 to index
    %c0_13 = arith.constant 0 : index
    %c0_14 = arith.constant 0 : index
    %30 = vector.load %arg3[%29, %c0_13, %c0_14] : memref<8x1x128xi8, #tpu.memory_space<vmem>>, vector<1x1x128xi8>
    %31 = vector.shape_cast %30 : vector<1x1x128xi8> to vector<1x128xi8>
    %c0_i8_15 = arith.constant 0 : i8
    %32 = vector.broadcast %c0_i8_15 : i8 to vector<1x128xi8>
    %33 = arith.cmpi ne, %31, %32 : vector<1x128xi8>
    %34 = arith.truncf %20 : vector<8x128xf32> to vector<8x128xbf16>
    %c0_16 = arith.constant 0 : index
    %c0_17 = arith.constant 0 : index
    %35 = vector.load %arg4[%c0_16, %c0_17] : memref<128x128xbf16, #tpu.memory_space<vmem>>, vector<128x128xbf16>
    %cst_18 = arith.constant dense<0.000000e+00> : vector<8x128xf32>
    %36 = tpu.matmul %34, %35, %cst_18 {dimension_numbers = #tpu.dot_dimension_numbers<[1], [0], [0], [1], [0, 0, 1, 1], [], []>} : vector<8x128xbf16>, vector<128x128xbf16>, vector<8x128xf32> -> vector<8x128xf32>
    %37 = arith.extf %28 : vector<8x128xbf16> to vector<8x128xf32>
    %38 = arith.addf %37, %36 : vector<8x128xf32>
    %39 = math.tanh %38 : vector<8x128xf32>
    %40 = vector.shape_cast %33 : vector<1x128xi1> to vector<1x128xi1>
    %41 = vector.broadcast %40 : vector<1x128xi1> to vector<8x128xi1>
    %42 = arith.select %41, %39, %20 : vector<8x128xi1>, vector<8x128xf32>
    %43 = arith.truncf %42 : vector<8x128xf32> to vector<8x128xbf16>
    %44 = arith.index_cast %c1_i32 : i32 to index
    %c0_19 = arith.constant 0 : index
    %c0_20 = arith.constant 0 : index
    %45 = vector.load %arg5[%44, %c0_19, %c0_20] : memref<8x8x128xbf16, #tpu.memory_space<vmem>>, vector<1x8x128xbf16>
    %46 = vector.shape_cast %45 : vector<1x8x128xbf16> to vector<8x128xbf16>
    %47 = vector.shape_cast %43 : vector<8x128xbf16> to vector<1x8x128xbf16>
    tpu.vector_store %arg5[%44, %c0_19, %c0_20], %47 {strides = array<i32>} : memref<8x8x128xbf16, #tpu.memory_space<vmem>>, vector<1x8x128xbf16>,
    %c2_i32 = arith.constant 2 : i32
    %48 = arith.index_cast %c2_i32 : i32 to index
    %c0_21 = arith.constant 0 : index
    %c0_22 = arith.constant 0 : index
    %49 = vector.load %arg2[%48, %c0_21, %c0_22] : memref<8x8x128xbf16, #tpu.memory_space<vmem>>, vector<1x8x128xbf16>
    %50 = vector.shape_cast %49 : vector<1x8x128xbf16> to vector<8x128xbf16>
    %51 = arith.index_cast %c2_i32 : i32 to index
    %c0_23 = arith.constant 0 : index
    %c0_24 = arith.constant 0 : index
    %52 = vector.load %arg3[%51, %c0_23, %c0_24] : memref<8x1x128xi8, #tpu.memory_space<vmem>>, vector<1x1x128xi8>
    %53 = vector.shape_cast %52 : vector<1x1x128xi8> to vector<1x128xi8>
    %c0_i8_25 = arith.constant 0 : i8
    %54 = vector.broadcast %c0_i8_25 : i8 to vector<1x128xi8>
    %55 = arith.cmpi ne, %53, %54 : vector<1x128xi8>
    %56 = arith.truncf %42 : vector<8x128xf32> to vector<8x128xbf16>
    %c0_26 = arith.constant 0 : index
    %c0_27 = arith.constant 0 : index
    %57 = vector.load %arg4[%c0_26, %c0_27] : memref<128x128xbf16, #tpu.memory_space<vmem>>, vector<128x128xbf16>
    %cst_28 = arith.constant dense<0.000000e+00> : vector<8x128xf32>
    %58 = tpu.matmul %56, %57, %cst_28 {dimension_numbers = #tpu.dot_dimension_numbers<[1], [0], [0], [1], [0, 0, 1, 1], [], []>} : vector<8x128xbf16>, vector<128x128xbf16>, vector<8x128xf32> -> vector<8x128xf32>
    %59 = arith.extf %50 : vector<8x128xbf16> to vector<8x128xf32>
    %60 = arith.addf %59, %58 : vector<8x128xf32>
    %61 = math.tanh %60 : vector<8x128xf32>
    %62 = vector.shape_cast %55 : vector<1x128xi1> to vector<1x128xi1>
    %63 = vector.broadcast %62 : vector<1x128xi1> to vector<8x128xi1>
    %64 = arith.select %63, %61, %42 : vector<8x128xi1>, vector<8x128xf32>
    %65 = arith.truncf %64 : vector<8x128xf32> to vector<8x128xbf16>
    %66 = arith.index_cast %c2_i32 : i32 to index
    %c0_29 = arith.constant 0 : index
    %c0_30 = arith.constant 0 : index
    %67 = vector.load %arg5[%66, %c0_29, %c0_30] : memref<8x8x128xbf16, #tpu.memory_space<vmem>>, vector<1x8x128xbf16>
    %68 = vector.shape_cast %67 : vector<1x8x128xbf16> to vector<8x128xbf16>
    %69 = vector.shape_cast %65 : vector<8x128xbf16> to vector<1x8x128xbf16>
    tpu.vector_store %arg5[%66, %c0_29, %c0_30], %69 {strides = array<i32>} : memref<8x8x128xbf16, #tpu.memory_space<vmem>>, vector<1x8x128xbf16>,
    %c3_i32 = arith.constant 3 : i32
    %70 = arith.index_cast %c3_i32 : i32 to index
    %c0_31 = arith.constant 0 : index
    %c0_32 = arith.constant 0 : index
    %71 = vector.load %arg2[%70, %c0_31, %c0_32] : memref<8x8x128xbf16, #tpu.memory_space<vmem>>, vector<1x8x128xbf16>
    %72 = vector.shape_cast %71 : vector<1x8x128xbf16> to vector<8x128xbf16>
    %73 = arith.index_cast %c3_i32 : i32 to index
    %c0_33 = arith.constant 0 : index
    %c0_34 = arith.constant 0 : index
    %74 = vector.load %arg3[%73, %c0_33, %c0_34] : memref<8x1x128xi8, #tpu.memory_space<vmem>>, vector<1x1x128xi8>
    %75 = vector.shape_cast %74 : vector<1x1x128xi8> to vector<1x128xi8>
    %c0_i8_35 = arith.constant 0 : i8
    %76 = vector.broadcast %c0_i8_35 : i8 to vector<1x128xi8>
    %77 = arith.cmpi ne, %75, %76 : vector<1x128xi8>
    %78 = arith.truncf %64 : vector<8x128xf32> to vector<8x128xbf16>
    %c0_36 = arith.constant 0 : index
    %c0_37 = arith.constant 0 : index
    %79 = vector.load %arg4[%c0_36, %c0_37] : memref<128x128xbf16, #tpu.memory_space<vmem>>, vector<128x128xbf16>
    %cst_38 = arith.constant dense<0.000000e+00> : vector<8x128xf32>
    %80 = tpu.matmul %78, %79, %cst_38 {dimension_numbers = #tpu.dot_dimension_numbers<[1], [0], [0], [1], [0, 0, 1, 1], [], []>} : vector<8x128xbf16>, vector<128x128xbf16>, vector<8x128xf32> -> vector<8x128xf32>
    %81 = arith.extf %72 : vector<8x128xbf16> to vector<8x128xf32>
    %82 = arith.addf %81, %80 : vector<8x128xf32>
    %83 = math.tanh %82 : vector<8x128xf32>
    %84 = vector.shape_cast %77 : vector<1x128xi1> to vector<1x128xi1>
    %85 = vector.broadcast %84 : vector<1x128xi1> to vector<8x128xi1>
    %86 = arith.select %85, %83, %64 : vector<8x128xi1>, vector<8x128xf32>
    %87 = arith.truncf %86 : vector<8x128xf32> to vector<8x128xbf16>
    %88 = arith.index_cast %c3_i32 : i32 to index
    %c0_39 = arith.constant 0 : index
    %c0_40 = arith.constant 0 : index
    %89 = vector.load %arg5[%88, %c0_39, %c0_40] : memref<8x8x128xbf16, #tpu.memory_space<vmem>>, vector<1x8x128xbf16>
    %90 = vector.shape_cast %89 : vector<1x8x128xbf16> to vector<8x128xbf16>
    %91 = vector.shape_cast %87 : vector<8x128xbf16> to vector<1x8x128xbf16>
    tpu.vector_store %arg5[%88, %c0_39, %c0_40], %91 {strides = array<i32>} : memref<8x8x128xbf16, #tpu.memory_space<vmem>>, vector<1x8x128xbf16>,
    %c4_i32 = arith.constant 4 : i32
    %92 = arith.index_cast %c4_i32 : i32 to index
    %c0_41 = arith.constant 0 : index
    %c0_42 = arith.constant 0 : index
    %93 = vector.load %arg2[%92, %c0_41, %c0_42] : memref<8x8x128xbf16, #tpu.memory_space<vmem>>, vector<1x8x128xbf16>
    %94 = vector.shape_cast %93 : vector<1x8x128xbf16> to vector<8x128xbf16>
    %95 = arith.index_cast %c4_i32 : i32 to index
    %c0_43 = arith.constant 0 : index
    %c0_44 = arith.constant 0 : index
    %96 = vector.load %arg3[%95, %c0_43, %c0_44] : memref<8x1x128xi8, #tpu.memory_space<vmem>>, vector<1x1x128xi8>
    %97 = vector.shape_cast %96 : vector<1x1x128xi8> to vector<1x128xi8>
    %c0_i8_45 = arith.constant 0 : i8
    %98 = vector.broadcast %c0_i8_45 : i8 to vector<1x128xi8>
    %99 = arith.cmpi ne, %97, %98 : vector<1x128xi8>
    %100 = arith.truncf %86 : vector<8x128xf32> to vector<8x128xbf16>
    %c0_46 = arith.constant 0 : index
    %c0_47 = arith.constant 0 : index
    %101 = vector.load %arg4[%c0_46, %c0_47] : memref<128x128xbf16, #tpu.memory_space<vmem>>, vector<128x128xbf16>
    %cst_48 = arith.constant dense<0.000000e+00> : vector<8x128xf32>
    %102 = tpu.matmul %100, %101, %cst_48 {dimension_numbers = #tpu.dot_dimension_numbers<[1], [0], [0], [1], [0, 0, 1, 1], [], []>} : vector<8x128xbf16>, vector<128x128xbf16>, vector<8x128xf32> -> vector<8x128xf32>
    %103 = arith.extf %94 : vector<8x128xbf16> to vector<8x128xf32>
    %104 = arith.addf %103, %102 : vector<8x128xf32>
    %105 = math.tanh %104 : vector<8x128xf32>
    %106 = vector.shape_cast %99 : vector<1x128xi1> to vector<1x128xi1>
    %107 = vector.broadcast %106 : vector<1x128xi1> to vector<8x128xi1>
    %108 = arith.select %107, %105, %86 : vector<8x128xi1>, vector<8x128xf32>
    %109 = arith.truncf %108 : vector<8x128xf32> to vector<8x128xbf16>
    %110 = arith.index_cast %c4_i32 : i32 to index
    %c0_49 = arith.constant 0 : index
    %c0_50 = arith.constant 0 : index
    %111 = vector.load %arg5[%110, %c0_49, %c0_50] : memref<8x8x128xbf16, #tpu.memory_space<vmem>>, vector<1x8x128xbf16>
    %112 = vector.shape_cast %111 : vector<1x8x128xbf16> to vector<8x128xbf16>
    %113 = vector.shape_cast %109 : vector<8x128xbf16> to vector<1x8x128xbf16>
    tpu.vector_store %arg5[%110, %c0_49, %c0_50], %113 {strides = array<i32>} : memref<8x8x128xbf16, #tpu.memory_space<vmem>>, vector<1x8x128xbf16>,
    %c5_i32 = arith.constant 5 : i32
    %114 = arith.index_cast %c5_i32 : i32 to index
    %c0_51 = arith.constant 0 : index
    %c0_52 = arith.constant 0 : index
    %115 = vector.load %arg2[%114, %c0_51, %c0_52] : memref<8x8x128xbf16, #tpu.memory_space<vmem>>, vector<1x8x128xbf16>
    %116 = vector.shape_cast %115 : vector<1x8x128xbf16> to vector<8x128xbf16>
    %117 = arith.index_cast %c5_i32 : i32 to index
    %c0_53 = arith.constant 0 : index
    %c0_54 = arith.constant 0 : index
    %118 = vector.load %arg3[%117, %c0_53, %c0_54] : memref<8x1x128xi8, #tpu.memory_space<vmem>>, vector<1x1x128xi8>
    %119 = vector.shape_cast %118 : vector<1x1x128xi8> to vector<1x128xi8>
    %c0_i8_55 = arith.constant 0 : i8
    %120 = vector.broadcast %c0_i8_55 : i8 to vector<1x128xi8>
    %121 = arith.cmpi ne, %119, %120 : vector<1x128xi8>
    %122 = arith.truncf %108 : vector<8x128xf32> to vector<8x128xbf16>
    %c0_56 = arith.constant 0 : index
    %c0_57 = arith.constant 0 : index
    %123 = vector.load %arg4[%c0_56, %c0_57] : memref<128x128xbf16, #tpu.memory_space<vmem>>, vector<128x128xbf16>
    %cst_58 = arith.constant dense<0.000000e+00> : vector<8x128xf32>
    %124 = tpu.matmul %122, %123, %cst_58 {dimension_numbers = #tpu.dot_dimension_numbers<[1], [0], [0], [1], [0, 0, 1, 1], [], []>} : vector<8x128xbf16>, vector<128x128xbf16>, vector<8x128xf32> -> vector<8x128xf32>
    %125 = arith.extf %116 : vector<8x128xbf16> to vector<8x128xf32>
    %126 = arith.addf %125, %124 : vector<8x128xf32>
    %127 = math.tanh %126 : vector<8x128xf32>
    %128 = vector.shape_cast %121 : vector<1x128xi1> to vector<1x128xi1>
    %129 = vector.broadcast %128 : vector<1x128xi1> to vector<8x128xi1>
    %130 = arith.select %129, %127, %108 : vector<8x128xi1>, vector<8x128xf32>
    %131 = arith.truncf %130 : vector<8x128xf32> to vector<8x128xbf16>
    %132 = arith.index_cast %c5_i32 : i32 to index
    %c0_59 = arith.constant 0 : index
    %c0_60 = arith.constant 0 : index
    %133 = vector.load %arg5[%132, %c0_59, %c0_60] : memref<8x8x128xbf16, #tpu.memory_space<vmem>>, vector<1x8x128xbf16>
    %134 = vector.shape_cast %133 : vector<1x8x128xbf16> to vector<8x128xbf16>
    %135 = vector.shape_cast %131 : vector<8x128xbf16> to vector<1x8x128xbf16>
    tpu.vector_store %arg5[%132, %c0_59, %c0_60], %135 {strides = array<i32>} : memref<8x8x128xbf16, #tpu.memory_space<vmem>>, vector<1x8x128xbf16>,
    %c6_i32 = arith.constant 6 : i32
    %136 = arith.index_cast %c6_i32 : i32 to index
    %c0_61 = arith.constant 0 : index
    %c0_62 = arith.constant 0 : index
    %137 = vector.load %arg2[%136, %c0_61, %c0_62] : memref<8x8x128xbf16, #tpu.memory_space<vmem>>, vector<1x8x128xbf16>
    %138 = vector.shape_cast %137 : vector<1x8x128xbf16> to vector<8x128xbf16>
    %139 = arith.index_cast %c6_i32 : i32 to index
    %c0_63 = arith.constant 0 : index
    %c0_64 = arith.constant 0 : index
    %140 = vector.load %arg3[%139, %c0_63, %c0_64] : memref<8x1x128xi8, #tpu.memory_space<vmem>>, vector<1x1x128xi8>
    %141 = vector.shape_cast %140 : vector<1x1x128xi8> to vector<1x128xi8>
    %c0_i8_65 = arith.constant 0 : i8
    %142 = vector.broadcast %c0_i8_65 : i8 to vector<1x128xi8>
    %143 = arith.cmpi ne, %141, %142 : vector<1x128xi8>
    %144 = arith.truncf %130 : vector<8x128xf32> to vector<8x128xbf16>
    %c0_66 = arith.constant 0 : index
    %c0_67 = arith.constant 0 : index
    %145 = vector.load %arg4[%c0_66, %c0_67] : memref<128x128xbf16, #tpu.memory_space<vmem>>, vector<128x128xbf16>
    %cst_68 = arith.constant dense<0.000000e+00> : vector<8x128xf32>
    %146 = tpu.matmul %144, %145, %cst_68 {dimension_numbers = #tpu.dot_dimension_numbers<[1], [0], [0], [1], [0, 0, 1, 1], [], []>} : vector<8x128xbf16>, vector<128x128xbf16>, vector<8x128xf32> -> vector<8x128xf32>
    %147 = arith.extf %138 : vector<8x128xbf16> to vector<8x128xf32>
    %148 = arith.addf %147, %146 : vector<8x128xf32>
    %149 = math.tanh %148 : vector<8x128xf32>
    %150 = vector.shape_cast %143 : vector<1x128xi1> to vector<1x128xi1>
    %151 = vector.broadcast %150 : vector<1x128xi1> to vector<8x128xi1>
    %152 = arith.select %151, %149, %130 : vector<8x128xi1>, vector<8x128xf32>
    %153 = arith.truncf %152 : vector<8x128xf32> to vector<8x128xbf16>
    %154 = arith.index_cast %c6_i32 : i32 to index
    %c0_69 = arith.constant 0 : index
    %c0_70 = arith.constant 0 : index
    %155 = vector.load %arg5[%154, %c0_69, %c0_70] : memref<8x8x128xbf16, #tpu.memory_space<vmem>>, vector<1x8x128xbf16>
    %156 = vector.shape_cast %155 : vector<1x8x128xbf16> to vector<8x128xbf16>
    %157 = vector.shape_cast %153 : vector<8x128xbf16> to vector<1x8x128xbf16>
    tpu.vector_store %arg5[%154, %c0_69, %c0_70], %157 {strides = array<i32>} : memref<8x8x128xbf16, #tpu.memory_space<vmem>>, vector<1x8x128xbf16>,
    %c7_i32 = arith.constant 7 : i32
    %158 = arith.index_cast %c7_i32 : i32 to index
    %c0_71 = arith.constant 0 : index
    %c0_72 = arith.constant 0 : index
    %159 = vector.load %arg2[%158, %c0_71, %c0_72] : memref<8x8x128xbf16, #tpu.memory_space<vmem>>, vector<1x8x128xbf16>
    %160 = vector.shape_cast %159 : vector<1x8x128xbf16> to vector<8x128xbf16>
    %161 = arith.index_cast %c7_i32 : i32 to index
    %c0_73 = arith.constant 0 : index
    %c0_74 = arith.constant 0 : index
    %162 = vector.load %arg3[%161, %c0_73, %c0_74] : memref<8x1x128xi8, #tpu.memory_space<vmem>>, vector<1x1x128xi8>
    %163 = vector.shape_cast %162 : vector<1x1x128xi8> to vector<1x128xi8>
    %c0_i8_75 = arith.constant 0 : i8
    %164 = vector.broadcast %c0_i8_75 : i8 to vector<1x128xi8>
    %165 = arith.cmpi ne, %163, %164 : vector<1x128xi8>
    %166 = arith.truncf %152 : vector<8x128xf32> to vector<8x128xbf16>
    %c0_76 = arith.constant 0 : index
    %c0_77 = arith.constant 0 : index
    %167 = vector.load %arg4[%c0_76, %c0_77] : memref<128x128xbf16, #tpu.memory_space<vmem>>, vector<128x128xbf16>
    %cst_78 = arith.constant dense<0.000000e+00> : vector<8x128xf32>
    %168 = tpu.matmul %166, %167, %cst_78 {dimension_numbers = #tpu.dot_dimension_numbers<[1], [0], [0], [1], [0, 0, 1, 1], [], []>} : vector<8x128xbf16>, vector<128x128xbf16>, vector<8x128xf32> -> vector<8x128xf32>
    %169 = arith.extf %160 : vector<8x128xbf16> to vector<8x128xf32>
    %170 = arith.addf %169, %168 : vector<8x128xf32>
    %171 = math.tanh %170 : vector<8x128xf32>
    %172 = vector.shape_cast %165 : vector<1x128xi1> to vector<1x128xi1>
    %173 = vector.broadcast %172 : vector<1x128xi1> to vector<8x128xi1>
    %174 = arith.select %173, %171, %152 : vector<8x128xi1>, vector<8x128xf32>
    %175 = arith.truncf %174 : vector<8x128xf32> to vector<8x128xbf16>
    %176 = arith.index_cast %c7_i32 : i32 to index
    %c0_79 = arith.constant 0 : index
    %c0_80 = arith.constant 0 : index
    %177 = vector.load %arg5[%176, %c0_79, %c0_80] : memref<8x8x128xbf16, #tpu.memory_space<vmem>>, vector<1x8x128xbf16>
    %178 = vector.shape_cast %177 : vector<1x8x128xbf16> to vector<8x128xbf16>
    %179 = vector.shape_cast %175 : vector<8x128xbf16> to vector<1x8x128xbf16>
    tpu.vector_store %arg5[%176, %c0_79, %c0_80], %179 {strides = array<i32>} : memref<8x8x128xbf16, #tpu.memory_space<vmem>>, vector<1x8x128xbf16>,
    %c8_i32 = arith.constant 8 : i32
    %c0_81 = arith.constant 0 : index
    %c0_82 = arith.constant 0 : index
    %180 = vector.load %arg6[%c0_81, %c0_82] : memref<8x128xf32, #tpu.memory_space<vmem>>, vector<8x128xf32>
    tpu.vector_store %arg6[%c0_81, %c0_82], %174 {strides = array<i32>} : memref<8x128xf32, #tpu.memory_space<vmem>>, vector<8x128xf32>,
    return
  }
  func.func @transform_0(%arg0: i32, %arg1: i32) -> (i32, i32, i32) {
    %c0_i32 = arith.constant 0 : i32
    %c0_i32_0 = arith.constant 0 : i32
    return %arg1, %arg0, %c0_i32 : i32, i32, i32
  }
  func.func @transform_1(%arg0: i32, %arg1: i32) -> (i32, i32, i32) {
    %c0_i32 = arith.constant 0 : i32
    %c0_i32_0 = arith.constant 0 : i32
    %c0_i32_1 = arith.constant 0 : i32
    return %arg1, %c0_i32, %c0_i32_0 : i32, i32, i32
  }
  func.func @transform_2(%arg0: i32, %arg1: i32) -> (i32, i32) {
    %c0_i32 = arith.constant 0 : i32
    %c0_i32_0 = arith.constant 0 : i32
    %c0_i32_1 = arith.constant 0 : i32
    return %c0_i32, %c0_i32_0 : i32, i32
  }
  func.func @transform_3(%arg0: i32, %arg1: i32) -> (i32, i32, i32) {
    %c0_i32 = arith.constant 0 : i32
    %c0_i32_0 = arith.constant 0 : i32
    return %arg1, %arg0, %c0_i32 : i32, i32, i32
  }
}

</mosaic_0001>

<bundles_post_ra>
// kernel: tpu_custom_call.1
= control target key start
LH: loop header
LB: loop body
LE: loop exit
PB: predicated region body
PF: predicated region fallthrough
CT: control target
= control target key end

     0   :  { %8 = vsyncpa [#allocation4], 0  ;;  %s1350_s0 = inlined_call_operand.hbm [shape: bf16[8,8,128], index: 0, kind: input, shape index: {}]   ;;  %s1351_s1 = inlined_call_operand.vmem [shape: s8[8,1,128], index: 1, kind: input, shape index: {}]   ;;  %s1352_s2 = inlined_call_operand.hbm [shape: bf16[128,128], index: 2, kind: input, shape index: {}]   ;;  %s1353_s3 = inlined_call_operand.hbm [shape: bf16[8,8,128], index: 3, kind: output, shape index: {}]  }
   0x1   :  { %9 = vsyncpa [#allocation7], 0 }
   0x2   :  { %10 = vsyncpa [#allocation5], 0  ;;  %s15_s14 = sshll.u32 %s1350_s0, 4  ;;  %s1265_s15 = smov [#allocation3]   ;;  %s16_s14 = int_to_ptr.hbm [resolvable:$true] %s15_s14 }
   0x3   :  { %s17_s16 = sshll.u32 %s1265_s15, 4  ;;  %s30_s19 = sshll.u32 %s1352_s2, 4  ;;  %s18_s16 = int_to_ptr.vmem [resolvable:$true] %s17_s16  ;;  %s31_s19 = int_to_ptr.hbm [resolvable:$true] %s30_s19 }
   0x4   :  { %s1266_s20 = smov 64   ;;  %s1267_s21 = smov 4  }
   0x5   :  { %23 = dma.hbm_to_vmem [thread:$0]  %s16_s14, 512, %s18_s16, [#allocation4], %s1266_s20, %s1266_s20, %s1267_s21  }
   0x6   :  { %s1268_s22 = smov [#allocation6]  }
   0x7   :  { %s32_s23 = sshll.u32 %s1268_s22, 4  ;;  %s33_s23 = int_to_ptr.vmem [resolvable:$true] %s32_s23 }
   0x8   :  { %38 = dma.hbm_to_vmem [thread:$0]  %s31_s19, 1024, %s33_s23, [#allocation7], %s1266_s20, %s1266_s20, %s1267_s21  }
   0x9   :  { %1259 = dma.done.wait [#allocation4], 512  }
   0xa   :  { %1260 = vsyncadd [#allocation4], 4294966784 }
   0xb   :  { %1261 = dma.done.wait [#allocation7], 1024  }
   0xc   :  { %1262 = vsyncadd [#allocation7], 4294966272  ;;  %v1104_v0 = vld [vmem:[#allocation6 + $0x38] sm:$0xff]  ;;  %v1103_v1 = vld [vmem:[#allocation6 + $0x30] sm:$0xff]  ;;  %v1269_v13 = vmov 0.0|0.0   ;;  %v1270_v21 = vmov 0  }
   0xd   :  { %123 = vmatpush.bf16.msra.mxu0 %v1104_v0  ;;  %v1112_v2 = vld [vmem:[#allocation6 + $0x38] sm:$0xff]  ;;  %v1111_v3 = vld [vmem:[#allocation6 + $0x30] sm:$0xff]  ;;  %v1102_v4 = vld [vmem:[#allocation6 + $0x28] sm:$0xff]  ;;  %s1271_s11 = smov [#allocation8]  }
   0xe   :  { %217 = vmatpush.bf16.msra.mxu1 %v1112_v2  ;;  %v1110_v5 = vld [vmem:[#allocation6 + $0x28] sm:$0xff]  ;;  %v1101_v6 = vld [vmem:[#allocation6 + $0x20] sm:$0xff]  ;;  %v1100_v8 = vld [vmem:[#allocation6 + $0x18] sm:$0xff]  ;;  %s818_s12 = sshll.u32 %s1271_s11, 4  ;;  %s819_s12 = int_to_ptr.vmem [resolvable:$true] %s818_s12 }
   0xf   :  { %v1109_v7 = vld [vmem:[#allocation6 + $0x20] sm:$0xff]  ;;  %v1108_v9 = vld [vmem:[#allocation6 + $0x18] sm:$0xff]  ;;  %v1099_v10 = vld [vmem:[#allocation6 + $0x10] sm:$0xff] }
  0x10   :  { %v1098_v11 = vld [vmem:[#allocation6 + $0x8] sm:$0xff]  ;;  %v1097_v12 = vld [vmem:[#allocation6] sm:$0xff]  ;;  %v1107_v14 = vld [vmem:[#allocation6 + $0x10] sm:$0xff] }
  0x11   :  { %124 = vmatpush.bf16.msra.mxu0 %v1103_v1  ;;  %v1106_v15 = vld [vmem:[#allocation6 + $0x8] sm:$0xff]  ;;  %v1105_v16 = vld [vmem:[#allocation6] sm:$0xff]  ;;  %v1120_v17 = vld [vmem:[#allocation6 + $0x38] sm:$0xff] }
  0x12   :  { %218 = vmatpush.bf16.msra.mxu1 %v1111_v3  ;;  %v56_v18 = vld [vmem:[%s1351_s1] sm:$0x1]  ;;  %312 = vmatpush.bf16.msra.mxu2 %v1120_v17  ;;  %v1119_v19 = vld [vmem:[#allocation6 + $0x30] sm:$0xff]  ;;  %v1118_v20 = vld [vmem:[#allocation6 + $0x28] sm:$0xff] }
  0x13   :  { %vm57_vm0 = vnez %v56_v18  ;;  %v1117_v23 = vld [vmem:[#allocation6 + $0x20] sm:$0xff]  ;;  %v1116_v26 = vld [vmem:[#allocation6 + $0x18] sm:$0xff]  ;;  %v1115_v37 = vld [vmem:[#allocation6 + $0x10] sm:$0xff] }
  0x14   :  { %v139_v22 = vsel %vm57_vm0, 16843009, %v1270_v21  ;;  %v55_v25 = vld [vmem:[#allocation3] sm:$0xff]   ;;  %v1114_v38 = vld [vmem:[#allocation6 + $0x8] sm:$0xff]  ;;  %v1128_v40 = vld [vmem:[#allocation6 + $0x38] sm:$0xff] }
  0x15   :  { %125 = vmatpush.bf16.msra.mxu0 %v1102_v4  ;;  %v140_v24 = vunpack.c.0.s8 %v139_v22  ;;  %v136_v27 = vunpack.c.l.bf16 %v55_v25  ;;  %v1113_v39 = vld [vmem:[#allocation6] sm:$0xff]  ;;  %407 = vmatpush.bf16.msra.mxu3 %v1128_v40  ;;  %v1127_v41 = vld [vmem:[#allocation6 + $0x30] sm:$0xff]  ;;  %v1126_v43 = vld [vmem:[#allocation6 + $0x28] sm:$0xff]  ;;  %v230_v48 = vunpack.c.h.bf16 %v55_v25 }
  0x16   :  { %219 = vmatpush.bf16.msra.mxu1 %v1110_v5  ;;  %313 = vmatpush.bf16.msra.mxu2 %v1119_v19  ;;  %v866_v42 = vld [vmem:[%s1351_s1 + $0x1] sm:$0x1]  ;;  %v1124_v47 = vld [vmem:[#allocation6 + $0x18] sm:$0xff]  ;;  %v1123_v57 = vld [vmem:[#allocation6 + $0x10] sm:$0xff] }
  0x17   :  { %vm141_vm1 = vcmp.ne.s32.totalorder %v140_v24, 0  ;;  %vm152_vm4 = vnez %v866_v42  ;;  %v1125_v45 = vld [vmem:[#allocation6 + $0x20] sm:$0xff]  ;;  %v1122_v58 = vld [vmem:[#allocation6 + $0x8] sm:$0xff]  ;;  %v1136_v60 = vld [vmem:[#allocation6 + $0x38] sm:$0xff] }
  0x18   :  { %v142_v28 = vsel %vm141_vm1, 1, %v1270_v21  ;;  %v233_v44 = vsel %vm152_vm4, 16843009, %v1270_v21  ;;  %v1121_v59 = vld [vmem:[#allocation6] sm:$0xff]  ;;  %v1135_v61 = vld [vmem:[#allocation6 + $0x30] sm:$0xff]  ;;  %v1134_v63 = vld [vmem:[#allocation6 + $0x28] sm:$0xff] }
  0x19   :  { %126 = vmatpush.bf16.msra.mxu0 %v1101_v6  ;;  %v143_v31 = vperm.slane %v142_v28, 0  ;;  %408 = vmatpush.bf16.msra.mxu3 %v1127_v41  ;;  %v234_v46 = vunpack.c.0.s8 %v233_v44  ;;  %v899_v62 = vld [vmem:[%s1351_s1 + $0x2] sm:$0x1]  ;;  %v244_v3 = vld [vmem:[#allocation3 + $0x8] sm:$0xff]   ;;  %v1132_v4 = vld [vmem:[#allocation6 + $0x18] sm:$0xff] }
  0x1a   :  { %220 = vmatpush.bf16.msra.mxu1 %v1109_v7  ;;  %314 = vmatpush.bf16.msra.mxu2 %v1118_v20  ;;  %vm247_vm7 = vnez %v899_v62  ;;  %v1133_v1 = vld [vmem:[#allocation6 + $0x20] sm:$0xff]  ;;  %v325_v5 = vunpack.c.l.bf16 %v244_v3  ;;  %v1144_v17 = vld [vmem:[#allocation6 + $0x38] sm:$0xff]  ;;  %v1143_v18 = vld [vmem:[#allocation6 + $0x30] sm:$0xff] }
  0x1b   :  { %vm144_vm2 = vcmp.eq.s32.totalorder %v143_v31, 1  ;;  %vm235_vm5 = vcmp.ne.s32.totalorder %v234_v46, 0  ;;  %v328_v0 = vsel %vm247_vm7, 16843009, %v1270_v21  ;;  %v932_v19 = vld [vmem:[%s1351_s1 + $0x3] sm:$0x1] }
  0x1c   :  { %vm1161_vm3 = vmpackc.low %vm144_vm2, %vm144_vm2  ;;  %v236_v50 = vsel %vm235_vm5, 1, %v1270_v21  ;;  %v329_v2 = vunpack.c.0.s8 %v328_v0  ;;  %vm342_vm10 = vnez %v932_v19  ;;  %v1142_v20 = vld [vmem:[#allocation6 + $0x28] sm:$0xff]  ;;  %v1140_v25 = vld [vmem:[#allocation6 + $0x18] sm:$0xff] }
  0x1d   :  { %127 = vmatpush.bf16.msra.mxu0 %v1100_v8  ;;  %409 = vmatpush.bf16.msra.mxu3 %v1126_v43  ;;  %v237_v52 = vperm.slane %v236_v50, 0  ;;  %v423_v22 = vsel %vm342_vm10, 16843009, %v1270_v21  ;;  %v965_v40 = vld [vmem:[%s1351_s1 + $0x4] sm:$0x1]  ;;  %v1150_v41 = vld [vmem:[#allocation6 + $0x28] sm:$0xff] }
  0x1e   :  { %221 = vmatpush.bf16.msra.mxu1 %v1108_v9  ;;  %315 = vmatpush.bf16.msra.mxu2 %v1117_v23  ;;  %vm330_vm8 = vcmp.ne.s32.totalorder %v329_v2, 0  ;;  %v1141_v23 = vld [vmem:[#allocation6 + $0x20] sm:$0xff]  ;;  %v424_v24 = vunpack.c.0.s8 %v423_v22  ;;  %vm437_vm13 = vnez %v965_v40  ;;  %v1148_v46 = vld [vmem:[#allocation6 + $0x18] sm:$0xff]  ;;  %v1158_v62 = vld [vmem:[#allocation6 + $0x28] sm:$0xff] }
  0x1f   :  { %vm238_vm6 = vcmp.eq.s32.totalorder %v237_v52, 1  ;;  %v331_v7 = vsel %vm330_vm8, 1, %v1270_v21  ;;  %v518_v42 = vsel %vm437_vm13, 16843009, %v1270_v21  ;;  %v1149_v43 = vld [vmem:[#allocation6 + $0x20] sm:$0xff]  ;;  %v1156_v2 = vld [vmem:[#allocation6 + $0x18] sm:$0xff] }
  0x20   :  { %v332_v9 = vperm.slane %v331_v7, 0  ;;  %vm425_vm11 = vcmp.ne.s32.totalorder %v424_v24, 0  ;;  %v519_v44 = vunpack.c.0.s8 %v518_v42  ;;  %v1157_v0 = vld [vmem:[#allocation6 + $0x20] sm:$0xff] }
  0x21   :  { %128 = vmatpush.bf16.msra.mxu0 %v1099_v10  ;;  %410 = vmatpush.bf16.msra.mxu3 %v1125_v45  ;;  %v426_v28 = vsel %vm425_vm11, 1, %v1270_v21  ;;  %v434_v45 = vld [vmem:[#allocation3 + $0x10] sm:$0xff]  }
  0x22   :  { %222 = vmatpush.bf16.msra.mxu1 %v1107_v14  ;;  %316 = vmatpush.bf16.msra.mxu2 %v1116_v26  ;;  %vm333_vm9 = vcmp.eq.s32.totalorder %v332_v9, 1  ;;  %v1131_v14 = vld [vmem:[#allocation6 + $0x10] sm:$0xff]  ;;  %v420_v26 = vunpack.c.h.bf16 %v244_v3  ;;  %vm520_vm14 = vcmp.ne.s32.totalorder %v519_v44, 0  ;;  %v610_v3 = vunpack.c.h.bf16 %v434_v45 }
  0x25   :  { %129 = vmatpush.bf16.msra.mxu0 %v1098_v11  ;;  %411 = vmatpush.bf16.msra.mxu3 %v1124_v47  ;;  %v515_v47 = vunpack.c.l.bf16 %v434_v45 }
  0x26   :  { %223 = vmatpush.bf16.msra.mxu1 %v1106_v15  ;;  %317 = vmatpush.bf16.msra.mxu2 %v1115_v37  ;;  %v1130_v15 = vld [vmem:[#allocation6 + $0x8] sm:$0xff]  ;;  %v1137_v37 = vld [vmem:[#allocation6] sm:$0xff] }
  0x29   :  { %130 = vmatpush.bf16.msra.mxu0 %v1097_v12  ;;  %412 = vmatpush.bf16.msra.mxu3 %v1123_v57  ;;  %v1146_v57 = vld [vmem:[#allocation6 + $0x8] sm:$0xff] }
  0x2a   :  { %224 = vmatpush.bf16.msra.mxu1 %v1105_v16  ;;  %318 = vmatpush.bf16.msra.mxu2 %v1114_v38  ;;  %v1129_v16 = vld [vmem:[#allocation6] sm:$0xff]  ;;  %v1152_v38 = vld [vmem:[#allocation6 + $0x38] sm:$0xff] }
  0x2c   :  { %131 = vmatmul.bf16.vlgmr.msra.gmra.mxu0 %v1269_v13 }
  0x2d   :  { %413 = vmatpush.bf16.msra.mxu3 %v1122_v58  ;;  %502 = vmatpush.bf16.msrb.mxu0 %v1136_v60  ;;  %v1145_v58 = vld [vmem:[#allocation6] sm:$0xff]  ;;  %v1159_v60 = vld [vmem:[#allocation6 + $0x30] sm:$0xff] }
  0x2e   :  { %319 = vmatpush.bf16.msra.mxu2 %v1113_v39  ;;  %597 = vmatpush.bf16.msrb.mxu1 %v1144_v17  ;;  %v1151_v39 = vld [vmem:[#allocation6 + $0x30] sm:$0xff] }
  0x31   :  { %414 = vmatpush.bf16.msra.mxu3 %v1121_v59  ;;  %503 = vmatpush.bf16.msrb.mxu0 %v1135_v61  ;;  %v1160_v59 = vld [vmem:[#allocation6 + $0x38] sm:$0xff]  ;;  %v998_v61 = vld [vmem:[%s1351_s1 + $0x5] sm:$0x1] }
  0x32   :  { %598 = vmatpush.bf16.msrb.mxu1 %v1143_v18  ;;  %692 = vmatpush.bf16.msrb.mxu2 %v1152_v38  ;;  %vm532_vm0 = vnez %v998_v61  ;;  %v624_v18 = vld [vmem:[#allocation3 + $0x18] sm:$0xff]  }
  0x33   :  { %v705_v19 = vunpack.c.l.bf16 %v624_v18 }
  0x35   :  { %504 = vmatpush.bf16.msrb.mxu0 %v1134_v63  ;;  %787 = vmatpush.bf16.msrb.mxu3 %v1160_v59  ;;  %v613_v63 = vsel %vm532_vm0, 16843009, %v1270_v21 }
  0x36   :  { %599 = vmatpush.bf16.msrb.mxu1 %v1142_v20  ;;  %693 = vmatpush.bf16.msrb.mxu2 %v1151_v39 }
  0x39   :  { %505 = vmatpush.bf16.msrb.mxu0 %v1133_v1  ;;  %788 = vmatpush.bf16.msrb.mxu3 %v1159_v60  ;;  %v614_v1 = vunpack.c.0.s8 %v613_v63 }
  0x3a   :  { %600 = vmatpush.bf16.msrb.mxu1 %v1141_v23  ;;  %694 = vmatpush.bf16.msrb.mxu2 %v1150_v41 }
  0x3b   :  { %vm615_vm1 = vcmp.ne.s32.totalorder %v614_v1, 0 }
  0x3d   :  { %506 = vmatpush.bf16.msrb.mxu0 %v1132_v4  ;;  %789 = vmatpush.bf16.msrb.mxu3 %v1158_v62 }
  0x3e   :  { %601 = vmatpush.bf16.msrb.mxu1 %v1140_v25  ;;  %695 = vmatpush.bf16.msrb.mxu2 %v1149_v43 }
  0x41   :  { %507 = vmatpush.bf16.msrb.mxu0 %v1131_v14  ;;  %790 = vmatpush.bf16.msrb.mxu3 %v1157_v0  ;;  %v1153_v14 = vld [vmem:[#allocation6] sm:$0xff] }
  0x42   :  { %696 = vmatpush.bf16.msrb.mxu2 %v1148_v46 }
  0x45   :  { %508 = vmatpush.bf16.msrb.mxu0 %v1130_v15  ;;  %791 = vmatpush.bf16.msrb.mxu3 %v1156_v2  ;;  %v1031_v15 = vld [vmem:[%s1351_s1 + $0x6] sm:$0x1] }
  0x49   :  { %509 = vmatpush.bf16.msrb.mxu0 %v1129_v16 }
  0xa9   :  { %v132_v29 = vpop.f32.mrf.mxu0 }
  0xaa   :  { %v137_v30 = vadd.f32 %v136_v27, %v132_v29 }
  0xac   :  { %1171 = vtanh.f32 %v137_v30  ;;  %v427_v30 = vperm.slane %v426_v28, 0 }
  0xae   :  { %vm428_vm12 = vcmp.eq.s32.totalorder %v427_v30, 1 }
  0xb1   :  { %v134_v32 = vpop.f32.mrf.mxu0 }
  0xb2   :  { %v1172_v33 = vpop.eup %1171 }
  0xb3   :  { %v145_v34 = vsel %vm144_vm2, %v1172_v33, 0.0  ;;  %v1162_v35 = vpack.c.bf16 %v1172_v33, %v1172_v33 }
  0xb4   :  { %v146_v36 = vpack.c.bf16 %v145_v34, %v145_v34 }
  0xb5   :  { %1163 = vmatmul.msk.bf16.vlgmr.msra.gmra.mxu1 %vm1161_vm3, %v1162_v35  ;;  %v1139_v35 = vld [vmem:[#allocation6 + $0x10] sm:$0xff]  ;;  %vm627_vm3 = vnez %v1031_v15 }
  0xb6   :  { %147 = vst [vmem:[#allocation8] sm:$0xf] %v146_v36  ;;  %602 = vmatpush.bf16.msrb.mxu1 %v1139_v35  ;;  %v1138_v36 = vld [vmem:[#allocation6 + $0x8] sm:$0xff]  ;;  %v708_v16 = vsel %vm627_vm3, 16843009, %v1270_v21 }
  0xb7   :  { %v709_v17 = vunpack.c.0.s8 %v708_v16 }
  0xb9   :  { %vm710_vm4 = vcmp.ne.s32.totalorder %v709_v17, 0 }
  0xba   :  { %603 = vmatpush.bf16.msrb.mxu1 %v1138_v36  ;;  %v711_v22 = vsel %vm710_vm4, 1, %v1270_v21 }
  0xbb   :  { %v712_v24 = vperm.slane %v711_v22, 0 }
  0xbd   :  { %vm713_vm5 = vcmp.eq.s32.totalorder %v712_v24, 1 }
  0xbe   :  { %604 = vmatpush.bf16.msrb.mxu1 %v1137_v37 }
 0x132   :  { %v226_v49 = vpop.f32.mrf.mxu1 }
 0x133   :  { %v231_v51 = vadd.f32 %v230_v48, %v226_v49  ;;  %v521_v49 = vsel %vm520_vm14, 1, %v1270_v21 }
 0x135   :  { %1173 = vtanh.f32 %v231_v51  ;;  %v522_v51 = vperm.slane %v521_v49, 0 }
 0x137   :  { %vm523_vm15 = vcmp.eq.s32.totalorder %v522_v51, 1 }
 0x13a   :  { %v228_v53 = vpop.f32.mrf.mxu1 }
 0x13b   :  { %v1174_v54 = vpop.eup %1173 }
 0x13c   :  { %v239_v55 = vsel %vm238_vm6, %v1174_v54, %v145_v34 }
 0x13d   :  { %v240_v56 = vpack.c.bf16 %v239_v55, %v239_v55 }
 0x13f   :  { %242 = vst [vmem:[#allocation8 + $0x4] sm:$0xf] %v240_v56  ;;  %320 = vmatmul.bf16.vlgmr.msra.gmra.mxu2 %v240_v56  ;;  %v1147_v56 = vld [vmem:[#allocation6 + $0x10] sm:$0xff] }
 0x140   :  { %697 = vmatpush.bf16.msrb.mxu2 %v1147_v56 }
 0x144   :  { %698 = vmatpush.bf16.msrb.mxu2 %v1146_v57 }
 0x148   :  { %699 = vmatpush.bf16.msrb.mxu2 %v1145_v58 }
 0x1c2   :  { %v321_v6 = vpop.f32.mrf.mxu2 }
 0x1c3   :  { %v326_v8 = vadd.f32 %v325_v5, %v321_v6  ;;  %v616_v5 = vsel %vm615_vm1, 1, %v1270_v21 }
 0x1c4   :  { %v617_v7 = vperm.slane %v616_v5, 0 }
 0x1c5   :  { %1175 = vtanh.f32 %v326_v8 }
 0x1c6   :  { %vm618_vm2 = vcmp.eq.s32.totalorder %v617_v7, 1 }
 0x1ca   :  { %v323_v10 = vpop.f32.mrf.mxu2 }
 0x1cb   :  { %v1176_v11 = vpop.eup %1175 }
 0x1cc   :  { %v334_v12 = vsel %vm333_vm9, %v1176_v11, %v239_v55 }
 0x1cd   :  { %v335_v13 = vpack.c.bf16 %v334_v12, %v334_v12 }
 0x1cf   :  { %337 = vst [vmem:[#allocation8 + $0x8] sm:$0xf] %v335_v13  ;;  %415 = vmatmul.bf16.vlgmr.msra.gmra.mxu3 %v335_v13  ;;  %v1154_v13 = vld [vmem:[#allocation6 + $0x8] sm:$0xff] }
 0x252   :  { %v416_v27 = vpop.f32.mrf.mxu3 }
 0x253   :  { %v421_v29 = vadd.f32 %v420_v26, %v416_v27 }
 0x255   :  { %1177 = vtanh.f32 %v421_v29  ;;  %v1064_v29 = vld [vmem:[%s1351_s1 + $0x7] sm:$0x1]  ;;  %s820_s1 = sshll.u32 %s1353_s3, 4  ;;  %s821_s1 = int_to_ptr.hbm [resolvable:$true] %s820_s1 }
 0x256   :  { %vm722_vm6 = vnez %v1064_v29 }
 0x257   :  { %v803_v30 = vsel %vm722_vm6, 16843009, %v1270_v21 }
 0x25a   :  { %v418_v31 = vpop.f32.mrf.mxu3 }
 0x25b   :  { %v1178_v32 = vpop.eup %1177  ;;  %v804_v31 = vunpack.c.0.s8 %v803_v30 }
 0x25c   :  { %v429_v33 = vsel %vm428_vm12, %v1178_v32, %v334_v12  ;;  %v1155_v12 = vld [vmem:[#allocation6 + $0x10] sm:$0xff]  ;;  %v800_v32 = vunpack.c.h.bf16 %v624_v18 }
 0x25d   :  { %v430_v34 = vpack.c.bf16 %v429_v33, %v429_v33  ;;  %792 = vmatpush.bf16.msrb.mxu3 %v1155_v12  ;;  %vm805_vm7 = vcmp.ne.s32.totalorder %v804_v31, 0 }
 0x25f   :  { %432 = vst [vmem:[#allocation8 + $0xc] sm:$0xf] %v430_v34  ;;  %510 = vmatmul.bf16.vlgmr.msrb.gmra.mxu0 %v430_v34  ;;  %v806_v34 = vsel %vm805_vm7, 1, %v1270_v21 }
 0x260   :  { %v807_v36 = vperm.slane %v806_v34, 0 }
 0x261   :  { %793 = vmatpush.bf16.msrb.mxu3 %v1154_v13 }
 0x262   :  { %vm808_vm8 = vcmp.eq.s32.totalorder %v807_v36, 1 }
 0x265   :  { %794 = vmatpush.bf16.msrb.mxu3 %v1153_v14 }
 0x2dc   :  { %v511_v48 = vpop.f32.mrf.mxu0 }
 0x2dd   :  { %v516_v50 = vadd.f32 %v515_v47, %v511_v48 }
 0x2df   :  { %1179 = vtanh.f32 %v516_v50 }
 0x2e4   :  { %v513_v52 = vpop.f32.mrf.mxu0 }
 0x2e5   :  { %v1180_v53 = vpop.eup %1179 }
 0x2e6   :  { %v524_v54 = vsel %vm523_vm15, %v1180_v53, %v429_v33 }
 0x2e7   :  { %v525_v55 = vpack.c.bf16 %v524_v54, %v524_v54 }
 0x2e9   :  { %527 = vst [vmem:[#allocation8 + $0x10] sm:$0xf] %v525_v55  ;;  %605 = vmatmul.bf16.vlgmr.msrb.gmra.mxu1 %v525_v55 }
 0x366   :  { %v606_v4 = vpop.f32.mrf.mxu1 }
 0x367   :  { %v611_v6 = vadd.f32 %v610_v3, %v606_v4 }
 0x369   :  { %1181 = vtanh.f32 %v611_v6 }
 0x36e   :  { %v608_v8 = vpop.f32.mrf.mxu1 }
 0x36f   :  { %v1182_v9 = vpop.eup %1181 }
 0x370   :  { %v619_v10 = vsel %vm618_vm2, %v1182_v9, %v524_v54 }
 0x371   :  { %v620_v11 = vpack.c.bf16 %v619_v10, %v619_v10 }
 0x373   :  { %622 = vst [vmem:[#allocation8 + $0x14] sm:$0xf] %v620_v11  ;;  %700 = vmatmul.bf16.vlgmr.msrb.gmra.mxu2 %v620_v11 }
 0x3f6   :  { %v701_v20 = vpop.f32.mrf.mxu2 }
 0x3f7   :  { %v706_v23 = vadd.f32 %v705_v19, %v701_v20 }
 0x3f9   :  { %1183 = vtanh.f32 %v706_v23 }
 0x3fe   :  { %v703_v25 = vpop.f32.mrf.mxu2 }
 0x3ff   :  { %v1184_v26 = vpop.eup %1183 }
 0x400   :  { %v714_v27 = vsel %vm713_vm5, %v1184_v26, %v619_v10 }
 0x401   :  { %v715_v28 = vpack.c.bf16 %v714_v27, %v714_v27 }
 0x403   :  { %717 = vst [vmem:[#allocation8 + $0x18] sm:$0xf] %v715_v28  ;;  %795 = vmatmul.bf16.vlgmr.msrb.gmra.mxu3 %v715_v28 }
 0x486   :  { %v796_v33 = vpop.f32.mrf.mxu3 }
 0x487   :  { %v801_v35 = vadd.f32 %v800_v32, %v796_v33 }
 0x489   :  { %1185 = vtanh.f32 %v801_v35 }
 0x48e   :  { %v798_v37 = vpop.f32.mrf.mxu3 }
 0x48f   :  { %v1186_v38 = vpop.eup %1185 }
 0x490   :  { %v809_v39 = vsel %vm808_vm8, %v1186_v38, %v714_v27 }
 0x491   :  { %v810_v40 = vpack.c.bf16 %v809_v39, %v809_v39 }
 0x493   :  { %812 = vst [vmem:[#allocation8 + $0x1c] sm:$0xf] %v810_v40 }
 0x494   :  { %826 = dma.vmem_to_hbm [thread:$0]  %s819_s12, 512, %s821_s1, [#allocation5], %s1266_s20, %s1266_s20, %s1267_s21  }
 0x495   :  { %1263 = dma.done.wait [#allocation5], 512  }
 0x496   :  { %1264 = vsyncadd [#allocation5], 4294966784 }
 0x497   :  { %831 = vsyncpa [#allocation4], 1 }
 0x498   :  { %832 = vsyncpa [#allocation7], 1 }
 0x499   :  { %833 = vsyncpa [#allocation5], 1 }

</bundles_post_ra>
